<compile_context>
chip_gen: v5e
topology: v5e:2x2
jax: 0.10.0
libtpu: 0.0.40
codegen_flags: <defaults>
</compile_context>

<pallas_src>
import functools

import jax
import jax.numpy as jnp
from jax import lax
from jax.experimental import pallas as pl
from jax.experimental.pallas import tpu as pltpu


def cheb_conv_kernel(x_ref, sa_t_ref, cheb_t_ref, theta_bd_ref, o_ref,
                     *, K, bt, apply_theta_first):
    # x_ref:        (bt, N, T*F_in)        graph signal, time folded into lanes
    # sa_t_ref:     (bt, n_tile, N)        A^T row-slice (pre-transposed)
    # cheb_t_ref:   (K, n_tile, N)         T_k^T row-slices
    # theta_bd_ref: (K, T*F_in, T*F_out)   block-diagonal Theta (grid-invariant)
    # o_ref:        (bt, n_tile, T*F_out)  lane-dense output slab

    def body(bi, carry):
        X = x_ref[bi]                       # (N, T*F_in)
        At = sa_t_ref[bi]                   # (n_tile, N)
        acc = jnp.zeros(o_ref.shape[1:], dtype=jnp.float32)
        for k in range(K):                  # K is small and static -> unrolled
            # (T_k ⊙ A)^T == T_k^T ⊙ A^T : once per (b, k), amortized over all T.
            TkAt = cheb_t_ref[k] * At       # (n_tile, N)
            th = theta_bd_ref[k]            # (T*F_in, T*F_out), block-diagonal
            if apply_theta_first:
                # F_out < F_in: shrink the lane width before the NxN graph matmul.
                P = jnp.dot(X, th, preferred_element_type=jnp.float32)    # (N, T*F_out)
                acc = acc + jnp.dot(TkAt, P, preferred_element_type=jnp.float32)
            else:
                # F_in <= F_out: graph matmul first, at width T*F_in.
                G = jnp.dot(TkAt, X, preferred_element_type=jnp.float32)  # (n_tile, T*F_in)
                acc = acc + jnp.dot(G, th, preferred_element_type=jnp.float32)
        # ReLU + one lane-dense store of the whole per-batch output slab.
        o_ref[bi] = jnp.maximum(acc, 0.0).astype(o_ref.dtype)
        return carry

    lax.fori_loop(0, bt, body, 0, unroll=True)


def _pick_n_tile(N, K, budget_bytes=16 * 2**20):
    """Row-tile so only a slice of each T_k is VMEM-resident for big graphs."""
    if 4 * K * N * N <= budget_bytes or N % 8 != 0:
        return N
    for d in range(N - 8, 0, -8):           # multiples of 8, descending
        if N % d == 0 and 4 * K * d * N <= budget_bytes:
            return d
    return N


def _pick_batch_tile(B, per_batch_bytes, vmem_budget=8 * 2**20):
    """Fold batches per grid step, keeping >= 2 steps when B >= 2 (megacore)."""
    if B <= 1:
        return 1
    best = 1
    for d in range(1, B + 1):
        if B % d == 0 and B // d >= 2 and d * per_batch_bytes <= vmem_budget:
            best = d
    return best


def cheb_conv_with_sat(x, spatial_attention, cheb, theta,
                       *, batch_tile=None, n_tile=None):
    """
    x:                 (B, N, F_in, T)   float32
    spatial_attention: (B, N, N)         float32
    cheb:              (K, N, N)         float32 (stacked cheb_polynomials)
    theta:             (K, F_in, F_out)  float32 (stacked Theta params)
    returns:           (B, N, F_out, T)  float32
    """
    B, N, F_in, T = x.shape
    K, _, F_out = theta.shape

    # ---- wrapper-side relayout (cheap XLA plumbing, outside the kernel) ----
    # x -> (B, N, T*F_in): lane-wide graph-matmul operand, time along lanes.
    x_wide = jnp.transpose(x, (0, 1, 3, 2)).reshape(B, N, T * F_in)
    # Pre-transpose A and T_k once so the kernel never uses the XLU.
    # TODO(synk): have the spatial-attention producer emit A^T directly to
    # avoid this extra B*N^2 HBM round trip.
    sa_t = jnp.swapaxes(spatial_attention, 1, 2)        # (B, N, N)  A^T
    cheb_t = jnp.swapaxes(cheb, 1, 2)                    # (K, N, N)  T_k^T
    # Block-diagonal Theta: one lane-dense matmul per k replaces T skinny
    # per-time matmuls + a 16-lane concatenate.
    eye_t = jnp.eye(T, dtype=theta.dtype)
    theta_bd = jnp.einsum('tu,kio->ktiuo', eye_t, theta).reshape(
        K, T * F_in, T * F_out)

    apply_theta_first = F_out < F_in

    if n_tile is None:
        n_tile = _pick_n_tile(N, K)
    if batch_tile is None:
        per_batch_bytes = 8 * (N * T * F_in + n_tile * N + n_tile * T * F_out)
        batch_tile = _pick_batch_tile(B, per_batch_bytes)
    bt = batch_tile
    assert B % bt == 0 and N % n_tile == 0
    nb, nn = B // bt, N // n_tile

    # Advisory cost estimate so XLA schedules surrounding ops around the call.
    if apply_theta_first:
        flops = 2 * B * K * (nn * N * (T * F_in) * (T * F_out)
                             + N * N * T * F_out)
    else:
        flops = 2 * B * K * (N * N * T * F_in
                             + N * (T * F_in) * (T * F_out))
    bytes_accessed = 4 * (B * N * T * F_in + B * N * N + K * N * N
                          + K * (T * F_in) * (T * F_out) + B * N * T * F_out)
    cost = pl.CostEstimate(flops=flops, transcendentals=0,
                           bytes_accessed=bytes_accessed)

    kernel = functools.partial(cheb_conv_kernel, K=K, bt=bt,
                               apply_theta_first=apply_theta_first)

    def run(single_buffer_invariants):
        # Grid-invariant operands only need one VMEM copy; default pipelining
        # would allocate a dead second buffer of K*N^2 / K*(T*F_in)*(T*F_out).
        inv_kwargs = (dict(pipeline_mode=pl.Buffered(1))
                      if single_buffer_invariants else {})
        cheb_kwargs = inv_kwargs if nn == 1 else {}  # cheb varies with n-tile
        inv_bufs = 1 if single_buffer_invariants else 2
        vmem_bytes = 4 * (2 * bt * N * T * F_in
                          + 2 * bt * n_tile * N
                          + 2 * bt * n_tile * T * F_out
                          + inv_bufs * K * n_tile * N
                          + inv_bufs * K * (T * F_in) * (T * F_out))
        vmem_limit = int(min(100 * 2**20, max(2 * vmem_bytes, 16 * 2**20)))

        grid_spec = pltpu.PrefetchScalarGridSpec(
            num_scalar_prefetch=0,
            grid=(nb, nn),
            in_specs=[
                # graph signal for bt batches, all T time steps at once
                pl.BlockSpec((bt, N, T * F_in), lambda b, n: (b, 0, 0)),
                # spatial attention (transposed), row-tile of output vertices
                pl.BlockSpec((bt, n_tile, N), lambda b, n: (b, n, 0)),
                # all K Chebyshev polynomials (transposed), row-tiled
                pl.BlockSpec((K, n_tile, N), lambda b, n: (0, n, 0),
                             **cheb_kwargs),
                # block-diagonal Theta (fully grid-invariant)
                pl.BlockSpec((K, T * F_in, T * F_out), lambda b, n: (0, 0, 0),
                             **inv_kwargs),
            ],
            out_specs=pl.BlockSpec((bt, n_tile, T * F_out),
                                   lambda b, n: (b, n, 0)),
        )
        return pl.pallas_call(
            kernel,
            out_shape=jax.ShapeDtypeStruct((B, N, T * F_out), jnp.float32),
            grid_spec=grid_spec,
            compiler_params=pltpu.CompilerParams(
                dimension_semantics=("parallel", "parallel"),
                vmem_limit_bytes=vmem_limit),
            cost_estimate=cost,
        )(x_wide, sa_t, cheb_t, theta_bd)

    try:
        out_wide = run(single_buffer_invariants=True)
    except Exception:
        # pipeline_mode=pl.Buffered(1) not supported on this jax version:
        # fall back to default double-buffering for the invariant inputs.
        out_wide = run(single_buffer_invariants=False)

    # (B, N, T*F_out) -> (B, N, T, F_out) -> PyTorch layout (B, N, F_out, T)
    return jnp.transpose(out_wide.reshape(B, N, T, F_out), (0, 1, 3, 2))


def _reference(x, sa, cheb, theta):
    """Pure-JAX reference mirroring the PyTorch forward (f32 precision)."""
    B, N, F_in, T = x.shape
    K = cheb.shape[0]
    F_out = theta.shape[2]
    outs = []
    for t in range(T):
        gs = x[:, :, :, t]                                   # (B, N, F_in)
        out = jnp.zeros((B, N, F_out), dtype=jnp.float32)
        for k in range(K):
            TkA = cheb[k][None, :, :] * sa                   # (B, N, N)
            rhs = jnp.einsum('bnm,bnf->bmf', TkA, gs)        # permute(0,2,1) @ gs
            out = out + rhs @ theta[k]
        outs.append(out[..., None])
    return jax.nn.relu(jnp.concatenate(outs, axis=-1))       # (B, N, F_out, T)


if __name__ == "__main__":
    # T*F_out = 128 -> lane-dense output block at test size as well.
    B, N, F_in, F_out, T, K = 2, 16, 4, 16, 8, 3

    key = jax.random.PRNGKey(0)
    k_x, k_sa, k_cheb, k_theta = jax.random.split(key, 4)

    x = jax.random.normal(k_x, (B, N, F_in, T), dtype=jnp.float32)
    spatial_attention = jax.random.uniform(k_sa, (B, N, N), dtype=jnp.float32)
    # cheb_polynomials: K matrices of shape (N, N), stacked
    cheb = jax.random.normal(k_cheb, (K, N, N), dtype=jnp.float32)
    # Theta: ParameterList of K (F_in, F_out) matrices init'd with torch.rand
    theta = jax.random.uniform(k_theta, (K, F_in, F_out), dtype=jnp.float32)

    out = cheb_conv_with_sat(x, spatial_attention, cheb, theta)
    jax.block_until_ready(out)

    assert out.shape == (B, N, F_out, T), out.shape
    ref = _reference(x, spatial_attention, cheb, theta)
    assert jnp.allclose(out, ref, atol=1e-4, rtol=1e-4), "mismatch vs reference"

    print("KERNEL_OK")
</pallas_src>

<mosaic_0001>
module attributes {stable_mosaic.version = 11 : i64} {
  func.func @cheb_conv_kernel(%arg0: i32, %arg1: i32, %arg2: memref<1x16x32xf32, #tpu.memory_space<vmem>>, %arg3: memref<1x16x16xf32, #tpu.memory_space<vmem>>, %arg4: memref<3x16x16xf32, #tpu.memory_space<vmem>>, %arg5: memref<3x32x128xf32, #tpu.memory_space<vmem>>, %arg6: memref<1x16x128xf32, #tpu.memory_space<vmem>>) attributes {dimension_semantics = [#tpu.dimension_semantics<parallel>, #tpu.dimension_semantics<parallel>], iteration_bounds = array<i64: 2, 1>, scalar_prefetch = 0 : i64, scratch_operands = 0 : i64, tpu.core_type = #tpu.core_type<tc>, window_params = [{transform_indices = @transform_0, window_bounds = array<i64: 1, 16, 32>}, {transform_indices = @transform_1, window_bounds = array<i64: 1, 16, 16>}, {pipeline_mode = #tpu.pipeline_mode<synchronous>, transform_indices = @transform_2, window_bounds = array<i64: 3, 16, 16>}, {pipeline_mode = #tpu.pipeline_mode<synchronous>, transform_indices = @transform_3, window_bounds = array<i64: 3, 32, 128>}, {transform_indices = @transform_4, window_bounds = array<i64: 1, 16, 128>}]} {
    %c0_i32 = arith.constant 0 : i32
    %0 = arith.index_cast %c0_i32 : i32 to index
    %c0 = arith.constant 0 : index
    %c0_0 = arith.constant 0 : index
    %1 = vector.load %arg2[%0, %c0, %c0_0] : memref<1x16x32xf32, #tpu.memory_space<vmem>>, vector<1x16x32xf32>
    %2 = vector.shape_cast %1 : vector<1x16x32xf32> to vector<16x32xf32>
    %3 = arith.index_cast %c0_i32 : i32 to index
    %c0_1 = arith.constant 0 : index
    %c0_2 = arith.constant 0 : index
    %4 = vector.load %arg3[%3, %c0_1, %c0_2] : memref<1x16x16xf32, #tpu.memory_space<vmem>>, vector<1x16x16xf32>
    %5 = vector.shape_cast %4 : vector<1x16x16xf32> to vector<16x16xf32>
    %cst = arith.constant 0.000000e+00 : f32
    %6 = vector.broadcast %cst : f32 to vector<16x128xf32>
    %c0_3 = arith.constant 0 : index
    %c0_4 = arith.constant 0 : index
    %c0_5 = arith.constant 0 : index
    %7 = vector.load %arg4[%c0_3, %c0_4, %c0_5] : memref<3x16x16xf32, #tpu.memory_space<vmem>>, vector<1x16x16xf32>
    %8 = vector.shape_cast %7 : vector<1x16x16xf32> to vector<16x16xf32>
    %9 = arith.mulf %8, %5 : vector<16x16xf32>
    %c0_6 = arith.constant 0 : index
    %c0_7 = arith.constant 0 : index
    %c0_8 = arith.constant 0 : index
    %10 = vector.load %arg5[%c0_6, %c0_7, %c0_8] : memref<3x32x128xf32, #tpu.memory_space<vmem>>, vector<1x32x128xf32>
    %11 = vector.shape_cast %10 : vector<1x32x128xf32> to vector<32x128xf32>
    %cst_9 = arith.constant dense<0.000000e+00> : vector<16x32xf32>
    %12 = tpu.matmul %9, %2, %cst_9 {dimension_numbers = #tpu.dot_dimension_numbers<[1], [0], [0], [1], [0, 0, 1, 1], [], []>} : vector<16x16xf32>, vector<16x32xf32>, vector<16x32xf32> -> vector<16x32xf32>
    %cst_10 = arith.constant dense<0.000000e+00> : vector<16x128xf32>
    %13 = tpu.matmul %12, %11, %cst_10 {dimension_numbers = #tpu.dot_dimension_numbers<[1], [0], [0], [1], [0, 0, 1, 1], [], []>} : vector<16x32xf32>, vector<32x128xf32>, vector<16x128xf32> -> vector<16x128xf32>
    %14 = arith.addf %6, %13 : vector<16x128xf32>
    %c1 = arith.constant 1 : index
    %c0_11 = arith.constant 0 : index
    %c0_12 = arith.constant 0 : index
    %15 = vector.load %arg4[%c1, %c0_11, %c0_12] : memref<3x16x16xf32, #tpu.memory_space<vmem>>, vector<1x16x16xf32>
    %16 = vector.shape_cast %15 : vector<1x16x16xf32> to vector<16x16xf32>
    %17 = arith.mulf %16, %5 : vector<16x16xf32>
    %c1_13 = arith.constant 1 : index
    %c0_14 = arith.constant 0 : index
    %c0_15 = arith.constant 0 : index
    %18 = vector.load %arg5[%c1_13, %c0_14, %c0_15] : memref<3x32x128xf32, #tpu.memory_space<vmem>>, vector<1x32x128xf32>
    %19 = vector.shape_cast %18 : vector<1x32x128xf32> to vector<32x128xf32>
    %cst_16 = arith.constant dense<0.000000e+00> : vector<16x32xf32>
    %20 = tpu.matmul %17, %2, %cst_16 {dimension_numbers = #tpu.dot_dimension_numbers<[1], [0], [0], [1], [0, 0, 1, 1], [], []>} : vector<16x16xf32>, vector<16x32xf32>, vector<16x32xf32> -> vector<16x32xf32>
    %cst_17 = arith.constant dense<0.000000e+00> : vector<16x128xf32>
    %21 = tpu.matmul %20, %19, %cst_17 {dimension_numbers = #tpu.dot_dimension_numbers<[1], [0], [0], [1], [0, 0, 1, 1], [], []>} : vector<16x32xf32>, vector<32x128xf32>, vector<16x128xf32> -> vector<16x128xf32>
    %22 = arith.addf %14, %21 : vector<16x128xf32>
    %c2 = arith.constant 2 : index
    %c0_18 = arith.constant 0 : index
    %c0_19 = arith.constant 0 : index
    %23 = vector.load %arg4[%c2, %c0_18, %c0_19] : memref<3x16x16xf32, #tpu.memory_space<vmem>>, vector<1x16x16xf32>
    %24 = vector.shape_cast %23 : vector<1x16x16xf32> to vector<16x16xf32>
    %25 = arith.mulf %24, %5 : vector<16x16xf32>
    %c2_20 = arith.constant 2 : index
    %c0_21 = arith.constant 0 : index
    %c0_22 = arith.constant 0 : index
    %26 = vector.load %arg5[%c2_20, %c0_21, %c0_22] : memref<3x32x128xf32, #tpu.memory_space<vmem>>, vector<1x32x128xf32>
    %27 = vector.shape_cast %26 : vector<1x32x128xf32> to vector<32x128xf32>
    %cst_23 = arith.constant dense<0.000000e+00> : vector<16x32xf32>
    %28 = tpu.matmul %25, %2, %cst_23 {dimension_numbers = #tpu.dot_dimension_numbers<[1], [0], [0], [1], [0, 0, 1, 1], [], []>} : vector<16x16xf32>, vector<16x32xf32>, vector<16x32xf32> -> vector<16x32xf32>
    %cst_24 = arith.constant dense<0.000000e+00> : vector<16x128xf32>
    %29 = tpu.matmul %28, %27, %cst_24 {dimension_numbers = #tpu.dot_dimension_numbers<[1], [0], [0], [1], [0, 0, 1, 1], [], []>} : vector<16x32xf32>, vector<32x128xf32>, vector<16x128xf32> -> vector<16x128xf32>
    %30 = arith.addf %22, %29 : vector<16x128xf32>
    %cst_25 = arith.constant 0.000000e+00 : f32
    %31 = vector.broadcast %cst_25 : f32 to vector<16x128xf32>
    %32 = arith.maximumf %30, %31 : vector<16x128xf32>
    %33 = arith.index_cast %c0_i32 : i32 to index
    %c0_26 = arith.constant 0 : index
    %c0_27 = arith.constant 0 : index
    %34 = vector.load %arg6[%33, %c0_26, %c0_27] : memref<1x16x128xf32, #tpu.memory_space<vmem>>, vector<1x16x128xf32>
    %35 = vector.shape_cast %34 : vector<1x16x128xf32> to vector<16x128xf32>
    %36 = vector.shape_cast %32 : vector<16x128xf32> to vector<1x16x128xf32>
    tpu.vector_store %arg6[%33, %c0_26, %c0_27], %36 {strides = array<i32>} : memref<1x16x128xf32, #tpu.memory_space<vmem>>, vector<1x16x128xf32>,
    %c1_i32 = arith.constant 1 : i32
    return
  }
  func.func @transform_0(%arg0: i32, %arg1: i32) -> (i32, i32, i32) {
    %c0_i32 = arith.constant 0 : i32
    %c0_i32_0 = arith.constant 0 : i32
    %c0_i32_1 = arith.constant 0 : i32
    return %arg0, %c0_i32, %c0_i32_0 : i32, i32, i32
  }
  func.func @transform_1(%arg0: i32, %arg1: i32) -> (i32, i32, i32) {
    %c0_i32 = arith.constant 0 : i32
    %c0_i32_0 = arith.constant 0 : i32
    return %arg0, %arg1, %c0_i32 : i32, i32, i32
  }
  func.func @transform_2(%arg0: i32, %arg1: i32) -> (i32, i32, i32) {
    %c0_i32 = arith.constant 0 : i32
    %c0_i32_0 = arith.constant 0 : i32
    %c0_i32_1 = arith.constant 0 : i32
    return %c0_i32, %arg1, %c0_i32_0 : i32, i32, i32
  }
  func.func @transform_3(%arg0: i32, %arg1: i32) -> (i32, i32, i32) {
    %c0_i32 = arith.constant 0 : i32
    %c0_i32_0 = arith.constant 0 : i32
    %c0_i32_1 = arith.constant 0 : i32
    %c0_i32_2 = arith.constant 0 : i32
    return %c0_i32, %c0_i32_0, %c0_i32_1 : i32, i32, i32
  }
  func.func @transform_4(%arg0: i32, %arg1: i32) -> (i32, i32, i32) {
    %c0_i32 = arith.constant 0 : i32
    %c0_i32_0 = arith.constant 0 : i32
    return %arg0, %arg1, %c0_i32 : i32, i32, i32
  }
}

module attributes {stable_mosaic.version = 11 : i64} {
  func.func @cheb_conv_kernel(%arg0: i32, %arg1: i32, %arg2: memref<1x16x32xf32, #tpu.memory_space<vmem>>, %arg3: memref<1x16x16xf32, #tpu.memory_space<vmem>>, %arg4: memref<3x16x16xf32, #tpu.memory_space<vmem>>, %arg5: memref<3x32x128xf32, #tpu.memory_space<vmem>>, %arg6: memref<1x16x128xf32, #tpu.memory_space<vmem>>) attributes {dimension_semantics = [#tpu.dimension_semantics<parallel>, #tpu.dimension_semantics<parallel>], iteration_bounds = array<i64: 2, 1>, scalar_prefetch = 0 : i64, scratch_operands = 0 : i64, tpu.core_type = #tpu.core_type<tc>, window_params = [{transform_indices = @transform_0, window_bounds = array<i64: 1, 16, 32>}, {transform_indices = @transform_1, window_bounds = array<i64: 1, 16, 16>}, {transform_indices = @transform_2, window_bounds = array<i64: 3, 16, 16>}, {pipeline_mode = #tpu.pipeline_mode<synchronous>, transform_indices = @transform_3, window_bounds = array<i64: 3, 32, 128>}, {transform_indices = @transform_4, window_bounds = array<i64: 1, 16, 128>}]} {
    %c0_i32 = arith.constant 0 : i32
    %0 = arith.index_cast %c0_i32 : i32 to index
    %c0 = arith.constant 0 : index
    %c0_0 = arith.constant 0 : index
    %1 = vector.load %arg2[%0, %c0, %c0_0] : memref<1x16x32xf32, #tpu.memory_space<vmem>>, vector<1x16x32xf32>
    %2 = vector.shape_cast %1 : vector<1x16x32xf32> to vector<16x32xf32>
    %3 = arith.index_cast %c0_i32 : i32 to index
    %c0_1 = arith.constant 0 : index
    %c0_2 = arith.constant 0 : index
    %4 = vector.load %arg3[%3, %c0_1, %c0_2] : memref<1x16x16xf32, #tpu.memory_space<vmem>>, vector<1x16x16xf32>
    %5 = vector.shape_cast %4 : vector<1x16x16xf32> to vector<16x16xf32>
    %cst = arith.constant 0.000000e+00 : f32
    %6 = vector.broadcast %cst : f32 to vector<16x128xf32>
    %c0_3 = arith.constant 0 : index
    %c0_4 = arith.constant 0 : index
    %c0_5 = arith.constant 0 : index
    %7 = vector.load %arg4[%c0_3, %c0_4, %c0_5] : memref<3x16x16xf32, #tpu.memory_space<vmem>>, vector<1x16x16xf32>
    %8 = vector.shape_cast %7 : vector<1x16x16xf32> to vector<16x16xf32>
    %9 = arith.mulf %8, %5 : vector<16x16xf32>
    %c0_6 = arith.constant 0 : index
    %c0_7 = arith.constant 0 : index
    %c0_8 = arith.constant 0 : index
    %10 = vector.load %arg5[%c0_6, %c0_7, %c0_8] : memref<3x32x128xf32, #tpu.memory_space<vmem>>, vector<1x32x128xf32>
    %11 = vector.shape_cast %10 : vector<1x32x128xf32> to vector<32x128xf32>
    %cst_9 = arith.constant dense<0.000000e+00> : vector<16x32xf32>
    %12 = tpu.matmul %9, %2, %cst_9 {dimension_numbers = #tpu.dot_dimension_numbers<[1], [0], [0], [1], [0, 0, 1, 1], [], []>} : vector<16x16xf32>, vector<16x32xf32>, vector<16x32xf32> -> vector<16x32xf32>
    %cst_10 = arith.constant dense<0.000000e+00> : vector<16x128xf32>
    %13 = tpu.matmul %12, %11, %cst_10 {dimension_numbers = #tpu.dot_dimension_numbers<[1], [0], [0], [1], [0, 0, 1, 1], [], []>} : vector<16x32xf32>, vector<32x128xf32>, vector<16x128xf32> -> vector<16x128xf32>
    %14 = arith.addf %6, %13 : vector<16x128xf32>
    %c1 = arith.constant 1 : index
    %c0_11 = arith.constant 0 : index
    %c0_12 = arith.constant 0 : index
    %15 = vector.load %arg4[%c1, %c0_11, %c0_12] : memref<3x16x16xf32, #tpu.memory_space<vmem>>, vector<1x16x16xf32>
    %16 = vector.shape_cast %15 : vector<1x16x16xf32> to vector<16x16xf32>
    %17 = arith.mulf %16, %5 : vector<16x16xf32>
    %c1_13 = arith.constant 1 : index
    %c0_14 = arith.constant 0 : index
    %c0_15 = arith.constant 0 : index
    %18 = vector.load %arg5[%c1_13, %c0_14, %c0_15] : memref<3x32x128xf32, #tpu.memory_space<vmem>>, vector<1x32x128xf32>
    %19 = vector.shape_cast %18 : vector<1x32x128xf32> to vector<32x128xf32>
    %cst_16 = arith.constant dense<0.000000e+00> : vector<16x32xf32>
    %20 = tpu.matmul %17, %2, %cst_16 {dimension_numbers = #tpu.dot_dimension_numbers<[1], [0], [0], [1], [0, 0, 1, 1], [], []>} : vector<16x16xf32>, vector<16x32xf32>, vector<16x32xf32> -> vector<16x32xf32>
    %cst_17 = arith.constant dense<0.000000e+00> : vector<16x128xf32>
    %21 = tpu.matmul %20, %19, %cst_17 {dimension_numbers = #tpu.dot_dimension_numbers<[1], [0], [0], [1], [0, 0, 1, 1], [], []>} : vector<16x32xf32>, vector<32x128xf32>, vector<16x128xf32> -> vector<16x128xf32>
    %22 = arith.addf %14, %21 : vector<16x128xf32>
    %c2 = arith.constant 2 : index
    %c0_18 = arith.constant 0 : index
    %c0_19 = arith.constant 0 : index
    %23 = vector.load %arg4[%c2, %c0_18, %c0_19] : memref<3x16x16xf32, #tpu.memory_space<vmem>>, vector<1x16x16xf32>
    %24 = vector.shape_cast %23 : vector<1x16x16xf32> to vector<16x16xf32>
    %25 = arith.mulf %24, %5 : vector<16x16xf32>
    %c2_20 = arith.constant 2 : index
    %c0_21 = arith.constant 0 : index
    %c0_22 = arith.constant 0 : index
    %26 = vector.load %arg5[%c2_20, %c0_21, %c0_22] : memref<3x32x128xf32, #tpu.memory_space<vmem>>, vector<1x32x128xf32>
    %27 = vector.shape_cast %26 : vector<1x32x128xf32> to vector<32x128xf32>
    %cst_23 = arith.constant dense<0.000000e+00> : vector<16x32xf32>
    %28 = tpu.matmul %25, %2, %cst_23 {dimension_numbers = #tpu.dot_dimension_numbers<[1], [0], [0], [1], [0, 0, 1, 1], [], []>} : vector<16x16xf32>, vector<16x32xf32>, vector<16x32xf32> -> vector<16x32xf32>
    %cst_24 = arith.constant dense<0.000000e+00> : vector<16x128xf32>
    %29 = tpu.matmul %28, %27, %cst_24 {dimension_numbers = #tpu.dot_dimension_numbers<[1], [0], [0], [1], [0, 0, 1, 1], [], []>} : vector<16x32xf32>, vector<32x128xf32>, vector<16x128xf32> -> vector<16x128xf32>
    %30 = arith.addf %22, %29 : vector<16x128xf32>
    %cst_25 = arith.constant 0.000000e+00 : f32
    %31 = vector.broadcast %cst_25 : f32 to vector<16x128xf32>
    %32 = arith.maximumf %30, %31 : vector<16x128xf32>
    %33 = arith.index_cast %c0_i32 : i32 to index
    %c0_26 = arith.constant 0 : index
    %c0_27 = arith.constant 0 : index
    %34 = vector.load %arg6[%33, %c0_26, %c0_27] : memref<1x16x128xf32, #tpu.memory_space<vmem>>, vector<1x16x128xf32>
    %35 = vector.shape_cast %34 : vector<1x16x128xf32> to vector<16x128xf32>
    %36 = vector.shape_cast %32 : vector<16x128xf32> to vector<1x16x128xf32>
    tpu.vector_store %arg6[%33, %c0_26, %c0_27], %36 {strides = array<i32>} : memref<1x16x128xf32, #tpu.memory_space<vmem>>, vector<1x16x128xf32>,
    %c1_i32 = arith.constant 1 : i32
    return
  }
  func.func @transform_0(%arg0: i32, %arg1: i32) -> (i32, i32, i32) {
    %c0_i32 = arith.constant 0 : i32
    %c0_i32_0 = arith.constant 0 : i32
    %c0_i32_1 = arith.constant 0 : i32
    return %arg0, %c0_i32, %c0_i32_0 : i32, i32, i32
  }
  func.func @transform_1(%arg0: i32, %arg1: i32) -> (i32, i32, i32) {
    %c0_i32 = arith.constant 0 : i32
    %c0_i32_0 = arith.constant 0 : i32
    return %arg0, %arg1, %c0_i32 : i32, i32, i32
  }
  func.func @transform_2(%arg0: i32, %arg1: i32) -> (i32, i32, i32) {
    %c0_i32 = arith.constant 0 : i32
    %c0_i32_0 = arith.constant 0 : i32
    %c0_i32_1 = arith.constant 0 : i32
    return %c0_i32, %arg1, %c0_i32_0 : i32, i32, i32
  }
  func.func @transform_3(%arg0: i32, %arg1: i32) -> (i32, i32, i32) {
    %c0_i32 = arith.constant 0 : i32
    %c0_i32_0 = arith.constant 0 : i32
    %c0_i32_1 = arith.constant 0 : i32
    %c0_i32_2 = arith.constant 0 : i32
    return %c0_i32, %c0_i32_0, %c0_i32_1 : i32, i32, i32
  }
  func.func @transform_4(%arg0: i32, %arg1: i32) -> (i32, i32, i32) {
    %c0_i32 = arith.constant 0 : i32
    %c0_i32_0 = arith.constant 0 : i32
    return %arg0, %arg1, %c0_i32 : i32, i32, i32
  }
}

</mosaic_0001>

<bundles_post_ra>
// kernel: tpu_custom_call.1
= control target key start
LH: loop header
LB: loop body
LE: loop exit
PB: predicated region body
PF: predicated region fallthrough
CT: control target
= control target key end

     0   :  { %s1252_s0 = inlined_call_operand.hbm [shape: f32[2,16,32], index: 0, kind: input, shape index: {}]   ;;  %s1253_s1 = inlined_call_operand.hbm [shape: f32[2,16,16], index: 1, kind: input, shape index: {}]   ;;  %s1254_s2 = inlined_call_operand.hbm [shape: f32[3,16,16], index: 2, kind: input, shape index: {}]   ;;  %s1255_s3 = inlined_call_operand.hbm [shape: f32[3,32,128], index: 3, kind: input, shape index: {}]   ;;  %s1256_s4 = inlined_call_operand.hbm [shape: f32[2,16,128], index: 4, kind: output, shape index: {}]  }
   0x1   :  { %1263 = sst [smem:[#allocation19_spill]] %s1254_s2 }
   0x2   :  { %1264 = sst [smem:[#allocation20_spill]] %s1255_s3 }
   0x3   :  { %9 = vsyncpa [#allocation3], 0 }
   0x4   :  { %11 = vsyncpa [#allocation3 + $0x1], 0 }
   0x5   :  { %12 = vsyncpa [#allocation6], 0 }
   0x6   :  { %14 = vsyncpa [#allocation6 + $0x1], 0 }
   0x7   :  { %15 = vsyncpa [#allocation9], 0 }
   0x8   :  { %16 = vsyncpa [#allocation4], 0 }
   0x9   :  { %18 = vsyncpa [#allocation4 + $0x1], 0  ;;  %s1066_s15 = smov 0   ;;  %s1068_s16 = smov 0  }
   0xa   :  { %s1070_s17 = smov 0   ;;  %s1072_s18 = smov 0  }
   0xb   :  { %s1074_s19 = smov 0   ;;  %s1076_s20 = smov 0  }
   0xc LB: > { %1265 = sst [smem:[#allocation16_spill]] %s1029_s19  ;;  %s1097_s21 = sadd.s32 4294967295, %s1033_s20   ;;  %s1033_s20 = sphi %s1076_s20, %s24_s20   ;;  %s1029_s19 = sphi %s1074_s19, %s1279_s19   ;;  %s1025_s18 = sphi %s1072_s18, %s1278_s18   ;;  %s1021_s17 = sphi %s1070_s17, %s1282_s17   ;;  %s1017_s16 = sphi %s1068_s16, %s1281_s16   ;;  %s1013_s15 = sphi %s1066_s15, %s1280_s15  }
   0xd   : > { %s686_s22 = sadd.s32 4294967294, %s1033_s20   ;;  %p56_p0 = scmp.ne.s32.totalorder %s1017_s16, %s1013_s15 }
   0xe   : > { %p57_p1 = scmp.eq.s32.totalorder %s1097_s21, 0  ;;  %p157_p2 = scmp.eq.s32.totalorder %s1097_s21, 1 }
   0xf   : > { %p163_p3 = scmp.eq.s32.totalorder %s686_s22, 1  ;;  %p687_p5 = scmp.ge.s32.totalorder %s1033_s20, 1 }
  0x10   : > { %p1106_p4 = por %p57_p1, %p56_p0  ;;  %p170_p7 = scmp.lt.s32.totalorder %s1033_s20, 3 }
  0x11   : > { %p1111_p6 = por %p163_p3, %p56_p0  ;;  %s1268_s2 = sld [smem:[#allocation19_spill]] }
  0x12   : > { %p1119_p8 = pnand %p687_p5, %p170_p7  ;;  %s1035_s29 = smov [#allocation7]  }
  0x13   : > { %s186_s30 = sshll.u32 %s1035_s29, 4  ;;  %p690_p11 = scmp.ge.s32.totalorder %s1033_s20, 2  ;;  %s187_s30 = int_to_ptr.vmem [resolvable:$true] %s186_s30 }
  0x14   : > { %p741_p9 = pneg %p1119_p8  ;;  %s1270_s3 = sld [smem:[#allocation20_spill]] }
  0x15   : > { %s1257_s8 = smov 128   ;;  %s1259_s9 = smov 8  }
  0x16   : > { %p742_p10 = pnand %p741_p9, %p57_p1  ;;  %s1038_s10 = smov [#allocation8]  }
  0x17   : > { %s184_s27 = sshll.u32 %s1268_s2, 4  ;;  %s200_s11 = sshll.u32 %s1038_s10, 4  ;;  %s185_s27 = int_to_ptr.hbm [resolvable:$true] %s184_s27  ;;  %s201_s11 = int_to_ptr.vmem [resolvable:$true] %s200_s11 }
  0x18   : > { %744 = dma.hbm_to_vmem [thread:$0]  (!%p742_p10), %s185_s27, 768, %s187_s30, [#allocation6], %s1257_s8, %s1257_s8, %s1259_s9  }
  0x19   : > { %s36_s12 = sadd.s32 1, %s1029_s19  ;;  %s43_s13 = sadd.s32 1, %s1021_s17 }
  0x1a   : > { %s198_s7 = sshll.u32 %s1270_s3, 4  ;;  %p38_p12 = scmp.ge.s32.totalorder %s36_s12, 2  ;;  %s199_s7 = int_to_ptr.hbm [resolvable:$true] %s198_s7 }
  0x1b   : > { %747 = dma.hbm_to_vmem [thread:$0]  (!%p742_p10), %s199_s7, 1536, %s201_s11, [#allocation9], %s1257_s8, %s1257_s8, %s1259_s9  }
  0x1c   : > { %p50_p13 = scmp.ne.s32.totalorder %s1021_s17, %s1017_s16  ;;  %p51_p0 = scmp.eq.s32.totalorder %s1033_s20, 0 }
  0x1d   : > { %p761_p3 = scmp.lt.s32.totalorder %s1033_s20, 2  ;;  %s1284_s12 = smov (%p38_p12, %s36_s12), 0 }
  0x1e   : > { %1271 = sst [smem:[#allocation17_spill]] %s1284_s12  ;;  %p1145_p5 = por %p51_p0, %p50_p13 }
  0x1f   : > { %p1151_p7 = por %p157_p2, %p50_p13  ;;  %s40_s25 = ssub.s32 %s1029_s19, %s1284_s12 }
  0x20   : > { %s214_s26 = sand.u32 1, %s1021_s17   ;;  %p41_p9 = scmp.eq.s32.totalorder %s40_s25, 0 }
  0x21   : > { %s691_s27 = sshll.u32 %s214_s26, 4  ;;  %s720_s29 = sshll.u32 %s1029_s19, 4 }
  0x22   : > { %s1160_s30 = scalar_select %p41_p9, %s1021_s17, %s43_s13  }
  0x23   : > { %s223_s7 = scalar_lea.hbm %s1252_s0, %s720_s29  ;;  %s218_s11 = scalar_lea.vmem [#allocation2], %s691_s27 }
  0x24   : > { %1274 = sst [smem:[#allocation18_spill]] %s1160_s30  ;;  %s224_s10 = sshll.u32 %s223_s7, 4  ;;  %s225_s10 = int_to_ptr.hbm [resolvable:$true] %s224_s10 }
  0x25   : > { %s226_s8 = sshll.u32 %s218_s11, 4  ;;  %p749_p2 = pnand %p761_p3, %p1145_p5  ;;  %s227_s8 = int_to_ptr.vmem [resolvable:$true] %s226_s8 }
  0x26   : > { %s247_s25 = scalar_lea.hbm %s1253_s1, %s720_s29  ;;  %s240_s3 = scalar_lea.vmem [#allocation5], %s691_s27 }
  0x27   : > { %s250_s13 = sshll.u32 %s240_s3, 4  ;;  %s248_s12 = sshll.u32 %s247_s25, 4  ;;  %s249_s12 = int_to_ptr.hbm [resolvable:$true] %s248_s12  ;;  %s251_s13 = int_to_ptr.vmem [resolvable:$true] %s250_s13 }
  0x28   : > { %s215_s19 = scalar_lea.sflag [#allocation3], %s214_s26  ;;  %s1275_s30 = smov 8  }
  0x29   : > { %s1276_s5 = smov 128   ;;  %s236_s6 = sand.u32 1, %s1033_s20  }
  0x2a   : > { %751 = dma.hbm_to_vmem [thread:$0]  (!%p749_p2), %s225_s10, 256, %s227_s8, %s215_s19, %s1276_s5, %s1276_s5, %s1275_s30  }
  0x2b   : > { %s237_s7 = scalar_lea.sflag [#allocation6], %s236_s6  ;;  %262 = sbr.rel (%p1119_p8) target bundleno = 338 (0x152), region = 36 }
  0x2c   : > { %754 = dma.hbm_to_vmem [thread:$0]  (!%p749_p2), %s249_s12, 256, %s251_s13, %s237_s7, %s1276_s5, %s1276_s5, %s1275_s30  }
  0x2d   : > { %s1182_s2 = sand.u32 (!%p1119_p8), 1, %s1017_s16  }
  0x2e   : > { %s1185_s3 = sshll.u32 (!%p1119_p8), %s1182_s2, 4  ;;  %s265_s19 = scalar_lea.sflag (!%p1119_p8), [#allocation3], %s1182_s2 }
  0x2f   : > { %s268_s8 = scalar_lea.vmem (!%p1119_p8), [#allocation2], %s1185_s3 }
  0x30   : > { %992 = dma.done.wait (%p1106_p4), %s265_s19, 256  }
  0x31   : > { %994 = vsyncadd (%p1106_p4), %s265_s19, 4294967040  ;;  %s274_s28 = sand.u32 1, %s1097_s21   ;;  %s278_s12 = scalar_lea.vmem [#allocation5], %s1185_s3 }
  0x32   : > { %s275_s9 = scalar_lea.sflag [#allocation6], %s274_s28 }
  0x33   : > { %996 = dma.done.wait (%p1106_p4), %s275_s9, 256  }
  0x34   : > { %998 = vsyncadd (%p1106_p4), %s275_s9, 4294967040 }
  0x35   : > { %1000 = dma.done.wait (%p57_p1), [#allocation6], 768  }
  0x36   : > { %1002 = vsyncadd (%p57_p1), [#allocation6], 4294966528 }
  0x37   : > { %1004 = dma.done.wait (%p57_p1), [#allocation9], 1536  }
  0x38   : > { %1006 = vsyncadd (%p57_p1), [#allocation9], 4294965760  ;;  %v323_v0 = vld [vmem:[%s268_s8 + $0x8] sm:$0xff]  ;;  %v322_v1 = vld [vmem:[%s268_s8] sm:$0xff]  ;;  %vm334_vm0 = vcmask 130048   ;;  %vm403_vm1 = vcmask 261120  }
  0x39   : > { %v324_v2 = vld [vmem:[%s278_s12] sm:$0xff]  ;;  %355 = vmatpush.msra.mxu0 %v323_v0  ;;  %394 = vmatpush.msra.mxu1 %v323_v0  ;;  %v325_v5 = vld [vmem:[%s278_s12 + $0x8] sm:$0xff]  ;;  %s722_s21 = sshll.u32 %s1025_s18, 4  ;;  %s318_s23 = scalar_lea.vmem [#allocation10], %s1185_s3 }
  0x3a   : > { %v326_v3 = vld [vmem:[#allocation7] sm:$0xff]  ;;  %v365_v4 = vld [vmem:[#allocation7 + $0x10] sm:$0xff]  ;;  %723 = vmatpush.msra.mxu2 %v323_v0  ;;  %725 = vmatpush.msra.mxu3 %v323_v0  ;;  %v327_v8 = vld [vmem:[#allocation7 + $0x8] sm:$0xff]  ;;  %s550_s27 = scalar_lea.hbm %s1256_s4, %s722_s21  ;;  %s551_s29 = sshll.u32 %s318_s23, 4  ;;  %s552_s29 = int_to_ptr.vmem [resolvable:$true] %s551_s29 }
  0x3b   : > { %v328_v6 = vmul.f32 %v326_v3, %v324_v2  ;;  %v367_v7 = vmul.f32 %v365_v4, %v324_v2  ;;  %v366_v9 = vld [vmem:[#allocation7 + $0x18] sm:$0xff]  ;;  %356 = vmatpush.msra.mxu0 %v322_v1  ;;  %395 = vmatpush.msra.mxu1 %v322_v1  ;;  %v329_v10 = vmul.f32 %v327_v8, %v325_v5  ;;  %v463_v12 = vld [vmem:[#allocation7 + $0x20] sm:$0xff]  ;;  %v373_v13 = vld [vmem:[#allocation8 + $0x38] sm:$0xff]  ;;  %s553_s30 = sshll.u32 %s550_s27, 4  ;;  %s537_s18 = scalar_lea.sflag [#allocation4], %s1182_s2  ;;  %s554_s30 = int_to_ptr.hbm [resolvable:$true] %s553_s30 }
  0x3c   : > { %v368_v11 = vmul.f32 %v366_v9, %v325_v5  ;;  %724 = vmatpush.msra.mxu2 %v322_v1  ;;  %v333_v14 = vld [vmem:[#allocation8 + $0x18] sm:$0xff]  ;;  %726 = vmatpush.msra.mxu3 %v322_v1  ;;  %v372_v15 = vld [vmem:[#allocation8 + $0x30] sm:$0xff]  ;;  %v465_v17 = vmul.f32 %v463_v12, %v324_v2  ;;  %v371_v18 = vld [vmem:[#allocation8 + $0x28] sm:$0xff]  ;;  %s953_s10 = sshra.s32 %s554_s30, 4  ;;  %s959_s5 = scalar_lea.hbm %s1256_s4, 32  ;;  %s954_s10 = int_to_ptr.hbm [resolvable:$true] %s953_s10 }
  0x3d   : > { %703 = vmatmul.msk.f32.vlgmr.msra.gmra.mxu0 %vm334_vm0, %v328_v6  ;;  %705 = vmatmul.msk.f32.vlgmr.msra.gmra.mxu1 %vm334_vm0, %v367_v7  ;;  %v332_v16 = vld [vmem:[#allocation8 + $0x10] sm:$0xff]  ;;  %v331_v19 = vld [vmem:[#allocation8 + $0x8] sm:$0xff]  ;;  %v370_v20 = vld [vmem:[#allocation8 + $0x20] sm:$0xff]  ;;  %s955_s11 = scalar_lea.hbm %s954_s10, 16  ;;  %p960_p10 = scmp.lt.s32.totalorder %s954_s10, %s1256_s4 }
  0x3e   : > { %492 = vmatpush.msrb.mxu0 %v323_v0  ;;  %704 = vmatmul.msk.f32.vlgmr.msra.gmra.mxu2 %vm334_vm0, %v329_v10  ;;  %v330_v21 = vld [vmem:[#allocation8] sm:$0xff]  ;;  %v464_v22 = vld [vmem:[#allocation7 + $0x28] sm:$0xff]  ;;  %v470_v25 = vld [vmem:[#allocation8 + $0x50] sm:$0xff]  ;;  %p956_p1 = scmp.ne.s32.totalorder %s954_s10, %s955_s11  ;;  %p961_p12 = scmp.lt.s32.totalorder %s959_s5, %s955_s11 }
  0x3f   : > { %706 = vmatmul.msk.f32.vlgmr.msra.gmra.mxu3 %vm334_vm0, %v368_v11  ;;  %422 = vmatpush.msrb.mxu2 %v373_v13  ;;  %v466_v23 = vmul.f32 %v464_v22, %v325_v5  ;;  %v471_v24 = vld [vmem:[#allocation8 + $0x58] sm:$0xff]  ;;  %v469_v26 = vld [vmem:[#allocation8 + $0x48] sm:$0xff]  ;;  %v468_v27 = vld [vmem:[#allocation8 + $0x40] sm:$0xff] }
  0x40   : > { %493 = vmatpush.msrb.mxu0 %v322_v1  ;;  %451 = vmatpush.msrb.mxu3 %v333_v14  ;;  %p957_p4 = pnand %p956_p1, %p1151_p7  ;;  %p962_p13 = por %p961_p12, %p960_p10 }
  0x41   : > { %423 = vmatpush.msrb.mxu2 %v372_v15  ;;  %519 = vmatpush.msrb.mxu1 %v471_v24 }
  0x42   : > { %452 = vmatpush.msrb.mxu3 %v332_v16  ;;  %p958_p8 = pneg %p957_p4 }
  0x43   : > { %424 = vmatpush.msrb.mxu2 %v371_v18  ;;  %520 = vmatpush.msrb.mxu1 %v470_v25 }
  0x44   : > { %453 = vmatpush.msrb.mxu3 %v331_v19  ;;  %p963_p0 = pnand %p962_p13, %p958_p8 }
  0x45   : > { %711 = vmatmul.msk.f32.vlgmr.msrb.gmra.mxu0 %vm334_vm0, %v465_v17  ;;  %425 = vmatpush.msrb.mxu2 %v370_v20 }
  0x46   : > { %454 = vmatpush.msrb.mxu3 %v330_v21  ;;  %521 = vmatpush.msrb.mxu1 %v469_v26 }
  0x48   : > { %522 = vmatpush.msrb.mxu1 %v468_v27 }
  0x4d   : > { %712 = vmatmul.msk.f32.gmra.mxu0 %vm334_vm0, %v466_v23 }
  0xba   : > { %v358_v28 = vpop.f32.mrf.mxu0  ;;  %v397_v29 = vpop.f32.mrf.mxu1 }
  0xbb   : > { %707 = vmatmul.msk.f32.vlgmr.msrb.gmra.mxu2 %vm403_vm1, %v397_v29  ;;  %709 = vmatmul.msk.f32.vlgmr.msrb.gmra.mxu3 %vm403_vm1, %v358_v28 }
  0xc1   : > { %v361_v30 = vpop.f32.mrf.mxu2 }
  0xc2   : > { %v495_v31 = vpop.f32.mrf.mxu0  ;;  %v400_v32 = vpop.f32.mrf.mxu3 }
  0xc3   : > { %710 = vmatmul.msk.f32.gmra.mxu3 %vm403_vm1, %v361_v30  ;;  %713 = vmatmul.msk.f32.vlgmr.msrb.gmra.mxu1 %vm403_vm1, %v495_v31 }
  0xc4   : > { %708 = vmatmul.msk.f32.gmra.mxu2 %vm403_vm1, %v400_v32 }
  0xca   : > { %v498_v33 = vpop.f32.mrf.mxu0 }
  0xcb   : > { %714 = vmatmul.msk.f32.gmra.mxu1 %vm403_vm1, %v498_v33 }
 0x13e   : > { %v427_v34 = vpop.f32.mrf.mxu2  ;;  %v456_v35 = vpop.f32.mrf.mxu3 }
 0x13f   : > { %v457_v36 = vadd.f32 %v456_v35, %v427_v34 }
 0x140   : > { %v524_v37 = vpop.f32.mrf.mxu1 }
 0x141   : > { %v530_v38 = vadd.f32 %v524_v37, %v457_v36 }
 0x143   : > { %v532_v39 = vmax.f32 %v530_v38, 0.0 }
 0x145   : > { %534 = vst [vmem:[%s318_s23] sm:$0xff] %v532_v39 }
 0x146   : > { %v459_v40 = vpop.f32.mrf.mxu3 }
 0x147   : > { %v430_v41 = vpop.f32.mrf.mxu2 }
 0x148   : > { %v460_v42 = vadd.f32 %v459_v40, %v430_v41  ;;  %v527_v43 = vpop.f32.mrf.mxu1 }
 0x14a   : > { %v531_v44 = vadd.f32 %v527_v43, %v460_v42 }
 0x14c   : > { %v533_v45 = vmax.f32 %v531_v44, 0.0 }
 0x14e   : > { %535 = vst [vmem:[%s318_s23 + $0x8] sm:$0xff] %v533_v45 }
 0x14f   : > { %966 = shalt.err (!%p963_p0)
}
 0x150   : > { %s1039_s2 = smov 128   ;;  %s1040_s3 = smov 8  }
 0x151   : > { %739 = dma.vmem_to_hbm [thread:$0]  (%p1151_p7), %s552_s29, 256, %s554_s30, %s537_s18, %s1039_s2, %s1039_s2, %s1040_s3  }
 0x152 PF: > { %s568_s19 = sand.u32 1, %s1013_s15   ;;  %p756_p3 = pnand %p690_p11, %p1111_p6 }
 0x153   : > { %s569_s8 = scalar_lea.sflag [#allocation4], %s568_s19 }
 0x154   : > { %p757_p5 = pneg %p756_p3 }
 0x156   : > { %1008 = dma.done.wait (%p757_p5), %s569_s8, 256  }
 0x157   : > { %1010 = vsyncadd (%p757_p5), %s569_s8, 4294967040  ;;  %s24_s20 = sadd.s32 1, %s1033_s20   ;;  %s1277_s28 = sld [smem:[#allocation18_spill]] }
 0x158   : > { %p21_p9 = scmp.ge.s32.totalorder %s24_s20, 4   ;;  %s1278_s18 = sld [smem:[#allocation16_spill]] }
 0x159   : > { %s1279_s19 = sld [smem:[#allocation17_spill]]  ;;  %s1280_s15 = smov %s1017_s16 }
 0x15a   : > { %s1281_s16 = smov %s1021_s17  ;;  %23 = sbr.rel (!%p21_p9) target bundleno = 12 (0xc), region = 107 }
 0x15d   : > { %s1282_s17 = smov %s1277_s28 }
 0x15f   :  { %575 = vsyncpa [#allocation3], 1 }
 0x160   :  { %577 = vsyncpa [#allocation3 + $0x1], 1 }
 0x161   :  { %578 = vsyncpa [#allocation6], 1 }
 0x162   :  { %580 = vsyncpa [#allocation6 + $0x1], 1 }
 0x163   :  { %581 = vsyncpa [#allocation9], 1 }
 0x164   :  { %582 = vsyncpa [#allocation4], 1 }
 0x165   :  { %584 = vsyncpa [#allocation4 + $0x1], 1 }

// kernel: tpu_custom_call.1
= control target key start
LH: loop header
LB: loop body
LE: loop exit
PB: predicated region body
PF: predicated region fallthrough
CT: control target
= control target key end

     0   :  { %s1252_s0 = inlined_call_operand.hbm [shape: f32[2,16,32], index: 0, kind: input, shape index: {}]   ;;  %s1253_s1 = inlined_call_operand.hbm [shape: f32[2,16,16], index: 1, kind: input, shape index: {}]   ;;  %s1254_s2 = inlined_call_operand.hbm [shape: f32[3,16,16], index: 2, kind: input, shape index: {}]   ;;  %s1255_s3 = inlined_call_operand.hbm [shape: f32[3,32,128], index: 3, kind: input, shape index: {}]   ;;  %s1256_s4 = inlined_call_operand.hbm [shape: f32[2,16,128], index: 4, kind: output, shape index: {}]  }
   0x1   :  { %1263 = sst [smem:[#allocation19_spill]] %s1254_s2 }
   0x2   :  { %1264 = sst [smem:[#allocation20_spill]] %s1255_s3 }
   0x3   :  { %9 = vsyncpa [#allocation3], 0 }
   0x4   :  { %11 = vsyncpa [#allocation3 + $0x1], 0 }
   0x5   :  { %12 = vsyncpa [#allocation6], 0 }
   0x6   :  { %14 = vsyncpa [#allocation6 + $0x1], 0 }
   0x7   :  { %15 = vsyncpa [#allocation9], 0 }
   0x8   :  { %16 = vsyncpa [#allocation4], 0 }
   0x9   :  { %18 = vsyncpa [#allocation4 + $0x1], 0  ;;  %s1066_s15 = smov 0   ;;  %s1068_s16 = smov 0  }
   0xa   :  { %s1070_s17 = smov 0   ;;  %s1072_s18 = smov 0  }
   0xb   :  { %s1074_s19 = smov 0   ;;  %s1076_s20 = smov 0  }
   0xc LB: > { %1265 = sst [smem:[#allocation16_spill]] %s1029_s19  ;;  %s1097_s21 = sadd.s32 4294967295, %s1033_s20   ;;  %s1033_s20 = sphi %s1076_s20, %s24_s20   ;;  %s1029_s19 = sphi %s1074_s19, %s1279_s19   ;;  %s1025_s18 = sphi %s1072_s18, %s1278_s18   ;;  %s1021_s17 = sphi %s1070_s17, %s1282_s17   ;;  %s1017_s16 = sphi %s1068_s16, %s1281_s16   ;;  %s1013_s15 = sphi %s1066_s15, %s1280_s15  }
   0xd   : > { %s686_s22 = sadd.s32 4294967294, %s1033_s20   ;;  %p56_p0 = scmp.ne.s32.totalorder %s1017_s16, %s1013_s15 }
   0xe   : > { %p57_p1 = scmp.eq.s32.totalorder %s1097_s21, 0  ;;  %p157_p2 = scmp.eq.s32.totalorder %s1097_s21, 1 }
   0xf   : > { %p163_p3 = scmp.eq.s32.totalorder %s686_s22, 1  ;;  %p687_p5 = scmp.ge.s32.totalorder %s1033_s20, 1 }
  0x10   : > { %p1106_p4 = por %p57_p1, %p56_p0  ;;  %p170_p7 = scmp.lt.s32.totalorder %s1033_s20, 3 }
  0x11   : > { %p1111_p6 = por %p163_p3, %p56_p0  ;;  %s1268_s2 = sld [smem:[#allocation19_spill]] }
  0x12   : > { %p1119_p8 = pnand %p687_p5, %p170_p7  ;;  %s1035_s29 = smov [#allocation7]  }
  0x13   : > { %s186_s30 = sshll.u32 %s1035_s29, 4  ;;  %p690_p11 = scmp.ge.s32.totalorder %s1033_s20, 2  ;;  %s187_s30 = int_to_ptr.vmem [resolvable:$true] %s186_s30 }
  0x14   : > { %p741_p9 = pneg %p1119_p8  ;;  %s1270_s3 = sld [smem:[#allocation20_spill]] }
  0x15   : > { %s1257_s8 = smov 128   ;;  %s1259_s9 = smov 8  }
  0x16   : > { %p742_p10 = pnand %p741_p9, %p57_p1  ;;  %s1038_s10 = smov [#allocation8]  }
  0x17   : > { %s184_s27 = sshll.u32 %s1268_s2, 4  ;;  %s200_s11 = sshll.u32 %s1038_s10, 4  ;;  %s185_s27 = int_to_ptr.hbm [resolvable:$true] %s184_s27  ;;  %s201_s11 = int_to_ptr.vmem [resolvable:$true] %s200_s11 }
  0x18   : > { %744 = dma.hbm_to_vmem [thread:$0]  (!%p742_p10), %s185_s27, 768, %s187_s30, [#allocation6], %s1257_s8, %s1257_s8, %s1259_s9  }
  0x19   : > { %s36_s12 = sadd.s32 1, %s1029_s19  ;;  %s43_s13 = sadd.s32 1, %s1021_s17 }
  0x1a   : > { %s198_s7 = sshll.u32 %s1270_s3, 4  ;;  %p38_p12 = scmp.ge.s32.totalorder %s36_s12, 2  ;;  %s199_s7 = int_to_ptr.hbm [resolvable:$true] %s198_s7 }
  0x1b   : > { %747 = dma.hbm_to_vmem [thread:$0]  (!%p742_p10), %s199_s7, 1536, %s201_s11, [#allocation9], %s1257_s8, %s1257_s8, %s1259_s9  }
  0x1c   : > { %p50_p13 = scmp.ne.s32.totalorder %s1021_s17, %s1017_s16  ;;  %p51_p0 = scmp.eq.s32.totalorder %s1033_s20, 0 }
  0x1d   : > { %p761_p3 = scmp.lt.s32.totalorder %s1033_s20, 2  ;;  %s1284_s12 = smov (%p38_p12, %s36_s12), 0 }
  0x1e   : > { %1271 = sst [smem:[#allocation17_spill]] %s1284_s12  ;;  %p1145_p5 = por %p51_p0, %p50_p13 }
  0x1f   : > { %p1151_p7 = por %p157_p2, %p50_p13  ;;  %s40_s25 = ssub.s32 %s1029_s19, %s1284_s12 }
  0x20   : > { %s214_s26 = sand.u32 1, %s1021_s17   ;;  %p41_p9 = scmp.eq.s32.totalorder %s40_s25, 0 }
  0x21   : > { %s691_s27 = sshll.u32 %s214_s26, 4  ;;  %s720_s29 = sshll.u32 %s1029_s19, 4 }
  0x22   : > { %s1160_s30 = scalar_select %p41_p9, %s1021_s17, %s43_s13  }
  0x23   : > { %s223_s7 = scalar_lea.hbm %s1252_s0, %s720_s29  ;;  %s218_s11 = scalar_lea.vmem [#allocation2], %s691_s27 }
  0x24   : > { %1274 = sst [smem:[#allocation18_spill]] %s1160_s30  ;;  %s224_s10 = sshll.u32 %s223_s7, 4  ;;  %s225_s10 = int_to_ptr.hbm [resolvable:$true] %s224_s10 }
  0x25   : > { %s226_s8 = sshll.u32 %s218_s11, 4  ;;  %p749_p2 = pnand %p761_p3, %p1145_p5  ;;  %s227_s8 = int_to_ptr.vmem [resolvable:$true] %s226_s8 }
  0x26   : > { %s247_s25 = scalar_lea.hbm %s1253_s1, %s720_s29  ;;  %s240_s3 = scalar_lea.vmem [#allocation5], %s691_s27 }
  0x27   : > { %s250_s13 = sshll.u32 %s240_s3, 4  ;;  %s248_s12 = sshll.u32 %s247_s25, 4  ;;  %s249_s12 = int_to_ptr.hbm [resolvable:$true] %s248_s12  ;;  %s251_s13 = int_to_ptr.vmem [resolvable:$true] %s250_s13 }
  0x28   : > { %s215_s19 = scalar_lea.sflag [#allocation3], %s214_s26  ;;  %s1275_s30 = smov 8  }
  0x29   : > { %s1276_s5 = smov 128   ;;  %s236_s6 = sand.u32 1, %s1033_s20  }
  0x2a   : > { %751 = dma.hbm_to_vmem [thread:$0]  (!%p749_p2), %s225_s10, 256, %s227_s8, %s215_s19, %s1276_s5, %s1276_s5, %s1275_s30  }
  0x2b   : > { %s237_s7 = scalar_lea.sflag [#allocation6], %s236_s6  ;;  %262 = sbr.rel (%p1119_p8) target bundleno = 338 (0x152), region = 36 }
  0x2c   : > { %754 = dma.hbm_to_vmem [thread:$0]  (!%p749_p2), %s249_s12, 256, %s251_s13, %s237_s7, %s1276_s5, %s1276_s5, %s1275_s30  }
  0x2d   : > { %s1182_s2 = sand.u32 (!%p1119_p8), 1, %s1017_s16  }
  0x2e   : > { %s1185_s3 = sshll.u32 (!%p1119_p8), %s1182_s2, 4  ;;  %s265_s19 = scalar_lea.sflag (!%p1119_p8), [#allocation3], %s1182_s2 }
  0x2f   : > { %s268_s8 = scalar_lea.vmem (!%p1119_p8), [#allocation2], %s1185_s3 }
  0x30   : > { %992 = dma.done.wait (%p1106_p4), %s265_s19, 256  }
  0x31   : > { %994 = vsyncadd (%p1106_p4), %s265_s19, 4294967040  ;;  %s274_s28 = sand.u32 1, %s1097_s21   ;;  %s278_s12 = scalar_lea.vmem [#allocation5], %s1185_s3 }
  0x32   : > { %s275_s9 = scalar_lea.sflag [#allocation6], %s274_s28 }
  0x33   : > { %996 = dma.done.wait (%p1106_p4), %s275_s9, 256  }
  0x34   : > { %998 = vsyncadd (%p1106_p4), %s275_s9, 4294967040 }
  0x35   : > { %1000 = dma.done.wait (%p57_p1), [#allocation6], 768  }
  0x36   : > { %1002 = vsyncadd (%p57_p1), [#allocation6], 4294966528 }
  0x37   : > { %1004 = dma.done.wait (%p57_p1), [#allocation9], 1536  }
  0x38   : > { %1006 = vsyncadd (%p57_p1), [#allocation9], 4294965760  ;;  %v323_v0 = vld [vmem:[%s268_s8 + $0x8] sm:$0xff]  ;;  %v322_v1 = vld [vmem:[%s268_s8] sm:$0xff]  ;;  %vm334_vm0 = vcmask 130048   ;;  %vm403_vm1 = vcmask 261120  }
  0x39   : > { %v324_v2 = vld [vmem:[%s278_s12] sm:$0xff]  ;;  %355 = vmatpush.msra.mxu0 %v323_v0  ;;  %394 = vmatpush.msra.mxu1 %v323_v0  ;;  %v325_v5 = vld [vmem:[%s278_s12 + $0x8] sm:$0xff]  ;;  %s722_s21 = sshll.u32 %s1025_s18, 4  ;;  %s318_s23 = scalar_lea.vmem [#allocation10], %s1185_s3 }
  0x3a   : > { %v326_v3 = vld [vmem:[#allocation7] sm:$0xff]  ;;  %v365_v4 = vld [vmem:[#allocation7 + $0x10] sm:$0xff]  ;;  %723 = vmatpush.msra.mxu2 %v323_v0  ;;  %725 = vmatpush.msra.mxu3 %v323_v0  ;;  %v327_v8 = vld [vmem:[#allocation7 + $0x8] sm:$0xff]  ;;  %s550_s27 = scalar_lea.hbm %s1256_s4, %s722_s21  ;;  %s551_s29 = sshll.u32 %s318_s23, 4  ;;  %s552_s29 = int_to_ptr.vmem [resolvable:$true] %s551_s29 }
  0x3b   : > { %v328_v6 = vmul.f32 %v326_v3, %v324_v2  ;;  %v367_v7 = vmul.f32 %v365_v4, %v324_v2  ;;  %v366_v9 = vld [vmem:[#allocation7 + $0x18] sm:$0xff]  ;;  %356 = vmatpush.msra.mxu0 %v322_v1  ;;  %395 = vmatpush.msra.mxu1 %v322_v1  ;;  %v329_v10 = vmul.f32 %v327_v8, %v325_v5  ;;  %v463_v12 = vld [vmem:[#allocation7 + $0x20] sm:$0xff]  ;;  %v373_v13 = vld [vmem:[#allocation8 + $0x38] sm:$0xff]  ;;  %s553_s30 = sshll.u32 %s550_s27, 4  ;;  %s537_s18 = scalar_lea.sflag [#allocation4], %s1182_s2  ;;  %s554_s30 = int_to_ptr.hbm [resolvable:$true] %s553_s30 }
  0x3c   : > { %v368_v11 = vmul.f32 %v366_v9, %v325_v5  ;;  %724 = vmatpush.msra.mxu2 %v322_v1  ;;  %v333_v14 = vld [vmem:[#allocation8 + $0x18] sm:$0xff]  ;;  %726 = vmatpush.msra.mxu3 %v322_v1  ;;  %v372_v15 = vld [vmem:[#allocation8 + $0x30] sm:$0xff]  ;;  %v465_v17 = vmul.f32 %v463_v12, %v324_v2  ;;  %v371_v18 = vld [vmem:[#allocation8 + $0x28] sm:$0xff]  ;;  %s953_s10 = sshra.s32 %s554_s30, 4  ;;  %s959_s5 = scalar_lea.hbm %s1256_s4, 32  ;;  %s954_s10 = int_to_ptr.hbm [resolvable:$true] %s953_s10 }
  0x3d   : > { %703 = vmatmul.msk.f32.vlgmr.msra.gmra.mxu0 %vm334_vm0, %v328_v6  ;;  %705 = vmatmul.msk.f32.vlgmr.msra.gmra.mxu1 %vm334_vm0, %v367_v7  ;;  %v332_v16 = vld [vmem:[#allocation8 + $0x10] sm:$0xff]  ;;  %v331_v19 = vld [vmem:[#allocation8 + $0x8] sm:$0xff]  ;;  %v370_v20 = vld [vmem:[#allocation8 + $0x20] sm:$0xff]  ;;  %s955_s11 = scalar_lea.hbm %s954_s10, 16  ;;  %p960_p10 = scmp.lt.s32.totalorder %s954_s10, %s1256_s4 }
  0x3e   : > { %492 = vmatpush.msrb.mxu0 %v323_v0  ;;  %704 = vmatmul.msk.f32.vlgmr.msra.gmra.mxu2 %vm334_vm0, %v329_v10  ;;  %v330_v21 = vld [vmem:[#allocation8] sm:$0xff]  ;;  %v464_v22 = vld [vmem:[#allocation7 + $0x28] sm:$0xff]  ;;  %v470_v25 = vld [vmem:[#allocation8 + $0x50] sm:$0xff]  ;;  %p956_p1 = scmp.ne.s32.totalorder %s954_s10, %s955_s11  ;;  %p961_p12 = scmp.lt.s32.totalorder %s959_s5, %s955_s11 }
  0x3f   : > { %706 = vmatmul.msk.f32.vlgmr.msra.gmra.mxu3 %vm334_vm0, %v368_v11  ;;  %422 = vmatpush.msrb.mxu2 %v373_v13  ;;  %v466_v23 = vmul.f32 %v464_v22, %v325_v5  ;;  %v471_v24 = vld [vmem:[#allocation8 + $0x58] sm:$0xff]  ;;  %v469_v26 = vld [vmem:[#allocation8 + $0x48] sm:$0xff]  ;;  %v468_v27 = vld [vmem:[#allocation8 + $0x40] sm:$0xff] }
  0x40   : > { %493 = vmatpush.msrb.mxu0 %v322_v1  ;;  %451 = vmatpush.msrb.mxu3 %v333_v14  ;;  %p957_p4 = pnand %p956_p1, %p1151_p7  ;;  %p962_p13 = por %p961_p12, %p960_p10 }
  0x41   : > { %423 = vmatpush.msrb.mxu2 %v372_v15  ;;  %519 = vmatpush.msrb.mxu1 %v471_v24 }
  0x42   : > { %452 = vmatpush.msrb.mxu3 %v332_v16  ;;  %p958_p8 = pneg %p957_p4 }
  0x43   : > { %424 = vmatpush.msrb.mxu2 %v371_v18  ;;  %520 = vmatpush.msrb.mxu1 %v470_v25 }
  0x44   : > { %453 = vmatpush.msrb.mxu3 %v331_v19  ;;  %p963_p0 = pnand %p962_p13, %p958_p8 }
  0x45   : > { %711 = vmatmul.msk.f32.vlgmr.msrb.gmra.mxu0 %vm334_vm0, %v465_v17  ;;  %425 = vmatpush.msrb.mxu2 %v370_v20 }
  0x46   : > { %454 = vmatpush.msrb.mxu3 %v330_v21  ;;  %521 = vmatpush.msrb.mxu1 %v469_v26 }
  0x48   : > { %522 = vmatpush.msrb.mxu1 %v468_v27 }
  0x4d   : > { %712 = vmatmul.msk.f32.gmra.mxu0 %vm334_vm0, %v466_v23 }
  0xba   : > { %v358_v28 = vpop.f32.mrf.mxu0  ;;  %v397_v29 = vpop.f32.mrf.mxu1 }
  0xbb   : > { %707 = vmatmul.msk.f32.vlgmr.msrb.gmra.mxu2 %vm403_vm1, %v397_v29  ;;  %709 = vmatmul.msk.f32.vlgmr.msrb.gmra.mxu3 %vm403_vm1, %v358_v28 }
  0xc1   : > { %v361_v30 = vpop.f32.mrf.mxu2 }
  0xc2   : > { %v495_v31 = vpop.f32.mrf.mxu0  ;;  %v400_v32 = vpop.f32.mrf.mxu3 }
  0xc3   : > { %710 = vmatmul.msk.f32.gmra.mxu3 %vm403_vm1, %v361_v30  ;;  %713 = vmatmul.msk.f32.vlgmr.msrb.gmra.mxu1 %vm403_vm1, %v495_v31 }
  0xc4   : > { %708 = vmatmul.msk.f32.gmra.mxu2 %vm403_vm1, %v400_v32 }
  0xca   : > { %v498_v33 = vpop.f32.mrf.mxu0 }
  0xcb   : > { %714 = vmatmul.msk.f32.gmra.mxu1 %vm403_vm1, %v498_v33 }
 0x13e   : > { %v427_v34 = vpop.f32.mrf.mxu2  ;;  %v456_v35 = vpop.f32.mrf.mxu3 }
 0x13f   : > { %v457_v36 = vadd.f32 %v456_v35, %v427_v34 }
 0x140   : > { %v524_v37 = vpop.f32.mrf.mxu1 }
 0x141   : > { %v530_v38 = vadd.f32 %v524_v37, %v457_v36 }
 0x143   : > { %v532_v39 = vmax.f32 %v530_v38, 0.0 }
 0x145   : > { %534 = vst [vmem:[%s318_s23] sm:$0xff] %v532_v39 }
 0x146   : > { %v459_v40 = vpop.f32.mrf.mxu3 }
 0x147   : > { %v430_v41 = vpop.f32.mrf.mxu2 }
 0x148   : > { %v460_v42 = vadd.f32 %v459_v40, %v430_v41  ;;  %v527_v43 = vpop.f32.mrf.mxu1 }
 0x14a   : > { %v531_v44 = vadd.f32 %v527_v43, %v460_v42 }
 0x14c   : > { %v533_v45 = vmax.f32 %v531_v44, 0.0 }
 0x14e   : > { %535 = vst [vmem:[%s318_s23 + $0x8] sm:$0xff] %v533_v45 }
 0x14f   : > { %966 = shalt.err (!%p963_p0)
}
 0x150   : > { %s1039_s2 = smov 128   ;;  %s1040_s3 = smov 8  }
 0x151   : > { %739 = dma.vmem_to_hbm [thread:$0]  (%p1151_p7), %s552_s29, 256, %s554_s30, %s537_s18, %s1039_s2, %s1039_s2, %s1040_s3  }
 0x152 PF: > { %s568_s19 = sand.u32 1, %s1013_s15   ;;  %p756_p3 = pnand %p690_p11, %p1111_p6 }
 0x153   : > { %s569_s8 = scalar_lea.sflag [#allocation4], %s568_s19 }
 0x154   : > { %p757_p5 = pneg %p756_p3 }
 0x156   : > { %1008 = dma.done.wait (%p757_p5), %s569_s8, 256  }
 0x157   : > { %1010 = vsyncadd (%p757_p5), %s569_s8, 4294967040  ;;  %s24_s20 = sadd.s32 1, %s1033_s20   ;;  %s1277_s28 = sld [smem:[#allocation18_spill]] }
 0x158   : > { %p21_p9 = scmp.ge.s32.totalorder %s24_s20, 4   ;;  %s1278_s18 = sld [smem:[#allocation16_spill]] }
 0x159   : > { %s1279_s19 = sld [smem:[#allocation17_spill]]  ;;  %s1280_s15 = smov %s1017_s16 }
 0x15a   : > { %s1281_s16 = smov %s1021_s17  ;;  %23 = sbr.rel (!%p21_p9) target bundleno = 12 (0xc), region = 107 }
 0x15d   : > { %s1282_s17 = smov %s1277_s28 }
 0x15f   :  { %575 = vsyncpa [#allocation3], 1 }
 0x160   :  { %577 = vsyncpa [#allocation3 + $0x1], 1 }
 0x161   :  { %578 = vsyncpa [#allocation6], 1 }
 0x162   :  { %580 = vsyncpa [#allocation6 + $0x1], 1 }
 0x163   :  { %581 = vsyncpa [#allocation9], 1 }
 0x164   :  { %582 = vsyncpa [#allocation4], 1 }
 0x165   :  { %584 = vsyncpa [#allocation4 + $0x1], 1 }

</bundles_post_ra>
